<compile_context>
chip_gen: v7x
topology: tpu7x:2x2x1
jax: 0.10.0
libtpu: 0.0.40
codegen_flags: <defaults>
</compile_context>

<pallas_src>
import functools

import jax
import jax.numpy as jnp
from jax.experimental import pallas as pl
from jax.experimental.pallas import tpu as pltpu


def _round_up(x, m):
    return (x + m - 1) // m * m


def _hp_loss_kernel(B, tile_B, chunk_rows, use_visibility, visibility_weight,
                    mask_rows, *refs):
    """One grid step: weighted BCE-with-logits partial sum over tile_B rows.

    refs (use_visibility=True):  hp, pred, gt, vis, wpn, out
    refs (use_visibility=False): hp, pred, gt,      wpn, out
    """
    if use_visibility:
        hp_ref, pred_ref, gt_ref, vis_ref, wpn_ref, out_ref = refs
    else:
        hp_ref, pred_ref, gt_ref, wpn_ref, out_ref = refs
        vis_ref = None

    f32 = jnp.float32
    negw = wpn_ref[0:1, :]          # (1, A)  negative deepmar weights
    dwdif = wpn_ref[1:2, :]         # (1, A)  positive - negative weights
    vw = f32(visibility_weight)
    a_dim = pred_ref.shape[1]
    row_base = pl.program_id(0) * tile_B

    def contrib(start, rows):
        """Weighted per-element loss for rows [start, start+rows) of the tile."""
        sl = pl.ds(start, rows)
        hp = hp_ref[sl, :].astype(f32)        # (rows, 1) or (rows, A)
        pred = pred_ref[sl, :].astype(f32)    # (rows, A)
        gt = gt_ref[sl, :].astype(f32)        # (rows, A)

        # deepmar weight: where(gt==1, posw, negw); labels are binary, so this
        # is the linear blend (also the BCE weight since weights=None).
        dw = negw + gt * dwdif
        # target of the main term: 1 - prediction_correctness
        t1 = jnp.where(gt != 0.0, 1.0 - pred, pred)
        # numerically stable softplus, computed once on the hp column and
        # shared between the main and the visibility BCE terms.
        sp = jnp.maximum(hp, 0.0) + jnp.log1p(jnp.exp(-jnp.abs(hp)))

        if use_visibility:
            vis = vis_ref[sl, :].astype(f32)
            hv = vw * hp                       # column
            col = (1.0 + vw) * sp - hv         # column
            # dw*( (1+vw)*sp - hp*t1 - vw*hp*(1-vis) )
            c = dw * ((col - hp * t1) + hv * vis)
        else:
            c = dw * (sp - hp * t1)

        if mask_rows:
            row = jax.lax.broadcasted_iota(jnp.int32, (rows, 1), 0)
            c = jnp.where(row_base + start + row < B, c, 0.0)
        return c

    def fold8(c):
        # (rows, A) with rows % 8 == 0  ->  (8, A) via pure VPU vreg adds.
        r, a = c.shape
        return c if r == 8 else c.reshape(r // 8, 8, a).sum(axis=0)

    if tile_B <= chunk_rows:
        total = jnp.sum(contrib(0, tile_B), axis=0, keepdims=True)
    else:
        n_full = tile_B // chunk_rows
        rem = tile_B % chunk_rows

        def body(c, acc):
            start = pl.multiple_of(c * chunk_rows, chunk_rows)
            return acc + fold8(contrib(start, chunk_rows))

        acc8 = jax.lax.fori_loop(0, n_full, body,
                                 jnp.zeros((8, a_dim), f32))
        total = jnp.sum(acc8, axis=0, keepdims=True)
        if rem:
            total = total + jnp.sum(contrib(n_full * chunk_rows, rem),
                                    axis=0, keepdims=True)

    out_ref[...] = total.reshape(1, 1, a_dim)


def hardness_predictor_loss(hp_net_outputs,
                            main_net_predictions,
                            ground_truth_labels,
                            positive_attribute_ratios,
                            visibility_labels=None,
                            sigma=1.0,
                            use_deepmar_weighting=True,
                            use_visibility=False,
                            visibility_weight=1.0,
                            max_tile_rows=None):
    """JAX wrapper: tiling/parameter glue, hot path in Pallas."""
    # TODO(synk): only the (weights=None, use_deepmar_weighting=True) path is
    # implemented; an explicit `weights` argument is not plumbed through.
    assert use_deepmar_weighting, "kernel specialized for deepmar weighting"
    if use_visibility:
        assert visibility_labels is not None

    pred = jnp.asarray(main_net_predictions)
    B, A = pred.shape
    gt = jnp.asarray(ground_truth_labels)
    vis = jnp.asarray(visibility_labels) if use_visibility else None
    hp = jnp.asarray(hp_net_outputs)
    if hp.ndim == 1:
        hp = hp[:, None]
    hp_cols = hp.shape[1]

    # DeepMAR per-attribute weights as a tiny resident (2, A) f32 table:
    # row 0 = negative_weights, row 1 = positive_weights - negative_weights.
    ratios = jnp.asarray(positive_attribute_ratios, jnp.float32).reshape(A)
    posw = jnp.exp((1.0 - ratios) / sigma ** 2)
    negw = jnp.exp(ratios / sigma ** 2)
    wpn = jnp.stack([negw, posw - negw], axis=0)

    # ---- tile size & VMEM budget (generation-aware) ------------------------
    def _isz(x):
        return jnp.dtype(x.dtype).itemsize

    A_vmem = _round_up(A, 128)
    hp_lane = _round_up(hp_cols, 128)          # (tile_B,1) blocks lane-pad to 128
    per_row = A_vmem * (_isz(pred) + _isz(gt)
                        + (_isz(vis) if use_visibility else 0)) + hp_lane * _isz(hp)

    try:
        vmem_cap = int(getattr(pltpu.get_tpu_info(), "vmem_capacity_bytes",
                               64 << 20))
    except Exception:  # pragma: no cover - conservative fallback
        vmem_cap = 64 << 20
    budget = min(int(vmem_cap * 0.5), 64 << 20)   # double-buffered stream budget

    # In-kernel compute chunk: ~64K elements so live f32 intermediates stay
    # far below VMEM/vreg pressure regardless of tile_B.
    chunk_rows = max(32, (65536 // A_vmem) // 32 * 32)

    tile_B = budget // (2 * per_row)
    if max_tile_rows is not None:
        tile_B = min(tile_B, int(max_tile_rows))
    if tile_B >= B:
        tile_B = B                                     # whole batch, one block
    elif tile_B >= chunk_rows:
        tile_B = (tile_B // chunk_rows) * chunk_rows   # multiple of chunk (and 32)
    else:
        tile_B = max(8, (tile_B // 8) * 8)

    grid_n = pl.cdiv(B, tile_B)
    mask_rows = (B % tile_B) != 0

    need = 2 * tile_B * per_row + 4 * (3 * A_vmem * 4) + (64 << 10)
    vmem_limit = int(min(max(need + (8 << 20), 32 << 20), int(vmem_cap * 0.85)))

    # ---- specs --------------------------------------------------------------
    row_map = lambda i: (i, 0)
    tile_spec = pl.BlockSpec((tile_B, A), row_map)
    in_specs = [pl.BlockSpec((tile_B, hp_cols), row_map),   # hp (kept as column)
                tile_spec,                                   # predictions
                tile_spec]                                   # ground truth
    operands = [hp, pred, gt]
    if use_visibility:
        in_specs.append(tile_spec)                           # visibility
        operands.append(vis)
    in_specs.append(pl.BlockSpec((2, A), lambda i: (0, 0)))  # weight table
    operands.append(wpn)

    out_shape = jax.ShapeDtypeStruct((grid_n, 1, A), jnp.float32)
    out_spec = pl.BlockSpec((1, 1, A), lambda i: (i, 0, 0))

    bytes_accessed = sum(int(x.size) * _isz(x) for x in operands) + grid_n * A * 4
    flops = (14 if use_visibility else 9) * B * A
    transcendentals = 2 * B * hp_cols
    cost = pl.CostEstimate(flops=int(flops),
                           transcendentals=int(transcendentals),
                           bytes_accessed=int(bytes_accessed))

    kernel = functools.partial(_hp_loss_kernel, B, tile_B, chunk_rows,
                               bool(use_visibility), float(visibility_weight),
                               bool(mask_rows))

    partials = pl.pallas_call(
        kernel,
        out_shape=out_shape,
        grid_spec=pltpu.PrefetchScalarGridSpec(
            num_scalar_prefetch=0,
            grid=(grid_n,),
            in_specs=in_specs,
            out_specs=out_spec),
        compiler_params=pltpu.CompilerParams(
            dimension_semantics=("parallel",),
            vmem_limit_bytes=vmem_limit),
        cost_estimate=cost,
    )(*operands)

    return jnp.sum(partials) / jnp.float32(B * A)


def _reference_loss(hp, pred, gt, ratios, vis=None, sigma=1.0,
                    use_visibility=False, visibility_weight=1.0):
    """Pure-JAX reference of the PyTorch forward (same config)."""
    pred = jnp.asarray(pred, jnp.float32)
    B, A = pred.shape
    hp = jnp.asarray(hp, jnp.float32)
    if hp.ndim == 1:
        hp = hp[:, None]
    if hp.shape[1] != A:
        hp = jnp.broadcast_to(hp, (B, A))
    gt = jnp.asarray(gt, jnp.float32)
    ratios = jnp.asarray(ratios, jnp.float32)
    posw = jnp.exp((1.0 - ratios) / sigma ** 2)
    negw = jnp.exp(ratios / sigma ** 2)
    dw = jnp.where(gt == 1.0, posw, negw)
    corr = jnp.where(gt != 0.0, pred, 1.0 - pred)

    def bce(x, t, w):
        return jnp.mean(w * (jnp.maximum(x, 0.0) - x * t
                             + jnp.log1p(jnp.exp(-jnp.abs(x)))))

    loss = bce(hp, 1.0 - corr, dw)
    if use_visibility:
        vis = jnp.asarray(vis, jnp.float32)
        loss = loss + visibility_weight * bce(hp, 1.0 - vis, dw)
    return loss


def _check(name, got, want, rtol, atol):
    ok = jnp.allclose(got, want, rtol=rtol, atol=atol)
    assert bool(ok), f"{name}: got={got} want={want}"


if __name__ == "__main__":
    key = jax.random.PRNGKey(0)
    ks = jax.random.split(key, 6)

    # ---- test 1: lane-aligned, visibility on, narrow (bf16) big streams ----
    B, A = 16, 128
    hp1 = jax.random.normal(ks[0], (B, 1), jnp.float32)
    pred1 = jax.nn.sigmoid(jax.random.normal(ks[1], (B, A))).astype(jnp.bfloat16)
    gt1 = (jax.random.uniform(ks[2], (B, A)) > 0.5).astype(jnp.bfloat16)
    vis1 = (jax.random.uniform(ks[3], (B, A)) > 0.3).astype(jnp.bfloat16)
    ratios1 = jax.random.uniform(ks[4], (A,), jnp.float32, minval=0.05, maxval=0.95)

    loss1 = hardness_predictor_loss(hp1, pred1, gt1, ratios1,
                                    visibility_labels=vis1, sigma=1.2,
                                    use_visibility=True, visibility_weight=0.7)
    loss1 = jax.block_until_ready(loss1)
    ref1 = _reference_loss(hp1, pred1, gt1, ratios1, vis1, sigma=1.2,
                           use_visibility=True, visibility_weight=0.7)
    _check("test1", loss1, jax.block_until_ready(ref1), rtol=1e-4, atol=1e-5)

    # ---- test 2: misaligned f32 shapes, no visibility (buffer never DMA'd) -
    B2, A2 = 5, 70
    hp2 = jax.random.normal(ks[0], (B2, 1), jnp.float32)
    pred2 = jax.nn.sigmoid(jax.random.normal(ks[1], (B2, A2), jnp.float32))
    gt2 = (jax.random.uniform(ks[2], (B2, A2)) > 0.5).astype(jnp.float32)
    ratios2 = jax.random.uniform(ks[4], (A2,), jnp.float32, minval=0.05, maxval=0.95)

    loss2 = hardness_predictor_loss(hp2, pred2, gt2, ratios2, use_visibility=False)
    loss2 = jax.block_until_ready(loss2)
    ref2 = _reference_loss(hp2, pred2, gt2, ratios2, use_visibility=False)
    _check("test2", loss2, jax.block_until_ready(ref2), rtol=2e-5, atol=1e-6)

    # ---- test 3: multi-tile grid with partial last tile + int8 labels ------
    B3, A3 = 40, 200
    hp3 = jax.random.normal(ks[0], (B3, 1), jnp.float32)
    pred3 = jax.nn.sigmoid(jax.random.normal(ks[1], (B3, A3))).astype(jnp.bfloat16)
    gt3 = (jax.random.uniform(ks[2], (B3, A3)) > 0.5).astype(jnp.int8)
    vis3 = (jax.random.uniform(ks[3], (B3, A3)) > 0.3).astype(jnp.bfloat16)
    ratios3 = jax.random.uniform(ks[4], (A3,), jnp.float32, minval=0.05, maxval=0.95)

    loss3 = hardness_predictor_loss(hp3, pred3, gt3, ratios3,
                                    visibility_labels=vis3, sigma=0.9,
                                    use_visibility=True, visibility_weight=1.3,
                                    max_tile_rows=32)   # forces grid=2 + row mask
    loss3 = jax.block_until_ready(loss3)
    ref3 = _reference_loss(hp3, pred3, gt3, ratios3, vis3, sigma=0.9,
                           use_visibility=True, visibility_weight=1.3)
    _check("test3", loss3, jax.block_until_ready(ref3), rtol=1e-4, atol=1e-5)

    print("KERNEL_OK")
</pallas_src>

<mosaic_0001>
module attributes {stable_mosaic.version = 11 : i64} {
  func.func @_hp_loss_kernel(%arg0: i32, %arg1: memref<16x1xf32, #tpu.memory_space<vmem>>, %arg2: memref<16x128xbf16, #tpu.memory_space<vmem>>, %arg3: memref<16x128xbf16, #tpu.memory_space<vmem>>, %arg4: memref<16x128xbf16, #tpu.memory_space<vmem>>, %arg5: memref<2x128xf32, #tpu.memory_space<vmem>>, %arg6: memref<1x1x128xf32, #tpu.memory_space<vmem>>) attributes {dimension_semantics = [#tpu.dimension_semantics<parallel>], iteration_bounds = array<i64: 1>, scalar_prefetch = 0 : i64, scratch_operands = 0 : i64, tpu.core_type = #tpu.core_type<tc>, window_params = [{transform_indices = @transform_0, window_bounds = array<i64: 16, 1>}, {transform_indices = @transform_1, window_bounds = array<i64: 16, 128>}, {transform_indices = @transform_2, window_bounds = array<i64: 16, 128>}, {transform_indices = @transform_3, window_bounds = array<i64: 16, 128>}, {pipeline_mode = #tpu.pipeline_mode<synchronous>, transform_indices = @transform_4, window_bounds = array<i64: 2, 128>}, {transform_indices = @transform_5, window_bounds = array<i64: 1, 1, 128>}]} {
    %c0 = arith.constant 0 : index
    %c0_0 = arith.constant 0 : index
    %0 = vector.load %arg5[%c0, %c0_0] : memref<2x128xf32, #tpu.memory_space<vmem>>, vector<1x128xf32>
    %c1 = arith.constant 1 : index
    %c0_1 = arith.constant 0 : index
    %1 = vector.load %arg5[%c1, %c0_1] : memref<2x128xf32, #tpu.memory_space<vmem>>, vector<1x128xf32>
    %c0_2 = arith.constant 0 : index
    %c0_3 = arith.constant 0 : index
    %2 = vector.load %arg1[%c0_2, %c0_3] : memref<16x1xf32, #tpu.memory_space<vmem>>, vector<16x1xf32>
    %c0_4 = arith.constant 0 : index
    %c0_5 = arith.constant 0 : index
    %3 = vector.load %arg2[%c0_4, %c0_5] : memref<16x128xbf16, #tpu.memory_space<vmem>>, vector<16x128xbf16>
    %4 = arith.extf %3 : vector<16x128xbf16> to vector<16x128xf32>
    %c0_6 = arith.constant 0 : index
    %c0_7 = arith.constant 0 : index
    %5 = vector.load %arg3[%c0_6, %c0_7] : memref<16x128xbf16, #tpu.memory_space<vmem>>, vector<16x128xbf16>
    %6 = arith.extf %5 : vector<16x128xbf16> to vector<16x128xf32>
    %7 = vector.broadcast %1 : vector<1x128xf32> to vector<16x128xf32>
    %8 = arith.mulf %6, %7 : vector<16x128xf32>
    %9 = vector.broadcast %0 : vector<1x128xf32> to vector<16x128xf32>
    %10 = arith.addf %9, %8 : vector<16x128xf32>
    %cst = arith.constant 0.000000e+00 : f32
    %11 = vector.broadcast %cst : f32 to vector<16x128xf32>
    %12 = arith.cmpf one, %6, %11 : vector<16x128xf32>
    %cst_8 = arith.constant 1.000000e+00 : f32
    %13 = vector.broadcast %cst_8 : f32 to vector<16x128xf32>
    %14 = arith.subf %13, %4 : vector<16x128xf32>
    %15 = arith.select %12, %14, %4 : vector<16x128xi1>, vector<16x128xf32>
    %cst_9 = arith.constant 0.000000e+00 : f32
    %16 = vector.broadcast %cst_9 : f32 to vector<16x1xf32>
    %17 = arith.maximumf %2, %16 : vector<16x1xf32>
    %18 = math.absf %2 : vector<16x1xf32>
    %cst_10 = arith.constant 0.000000e+00 : f32
    %19 = vector.broadcast %cst_10 : f32 to vector<16x1xf32>
    %20 = arith.subf %19, %18 : vector<16x1xf32>
    %21 = math.exp %20 : vector<16x1xf32>
    %22 = math.log1p %21 : vector<16x1xf32>
    %23 = arith.addf %17, %22 : vector<16x1xf32>
    %c0_11 = arith.constant 0 : index
    %c0_12 = arith.constant 0 : index
    %24 = vector.load %arg4[%c0_11, %c0_12] : memref<16x128xbf16, #tpu.memory_space<vmem>>, vector<16x128xbf16>
    %25 = arith.extf %24 : vector<16x128xbf16> to vector<16x128xf32>
    %cst_13 = arith.constant 0.699999988 : f32
    %26 = vector.broadcast %cst_13 : f32 to vector<16x1xf32>
    %27 = arith.mulf %26, %2 : vector<16x1xf32>
    %cst_14 = arith.constant 1.000000e+00 : f32
    %cst_15 = arith.constant 0.699999988 : f32
    %28 = arith.addf %cst_14, %cst_15 : f32
    %29 = vector.broadcast %28 : f32 to vector<16x1xf32>
    %30 = arith.mulf %29, %23 : vector<16x1xf32>
    %31 = arith.subf %30, %27 : vector<16x1xf32>
    %32 = vector.broadcast %2 : vector<16x1xf32> to vector<16x128xf32>
    %33 = arith.mulf %32, %15 : vector<16x128xf32>
    %34 = vector.broadcast %31 : vector<16x1xf32> to vector<16x128xf32>
    %35 = arith.subf %34, %33 : vector<16x128xf32>
    %36 = vector.broadcast %27 : vector<16x1xf32> to vector<16x128xf32>
    %37 = arith.mulf %36, %25 : vector<16x128xf32>
    %38 = arith.addf %35, %37 : vector<16x128xf32>
    %39 = arith.mulf %10, %38 : vector<16x128xf32>
    %cst_16 = arith.constant dense<0.000000e+00> : vector<128xf32>
    %40 = vector.multi_reduction <add>, %39, %cst_16 [0] : vector<16x128xf32> to vector<128xf32>
    %41 = vector.shape_cast %40 : vector<128xf32> to vector<1x128xf32>
    %42 = vector.shape_cast %41 : vector<1x128xf32> to vector<1x1x128xf32>
    %c0_17 = arith.constant 0 : index
    %c0_18 = arith.constant 0 : index
    %c0_19 = arith.constant 0 : index
    %43 = vector.load %arg6[%c0_17, %c0_18, %c0_19] : memref<1x1x128xf32, #tpu.memory_space<vmem>>, vector<1x1x128xf32>
    tpu.vector_store %arg6[%c0_17, %c0_18, %c0_19], %42 {strides = array<i32>} : memref<1x1x128xf32, #tpu.memory_space<vmem>>, vector<1x1x128xf32>,
    return
  }
  func.func @transform_0(%arg0: i32) -> (i32, i32) {
    %c0_i32 = arith.constant 0 : i32
    %c0_i32_0 = arith.constant 0 : i32
    return %arg0, %c0_i32 : i32, i32
  }
  func.func @transform_1(%arg0: i32) -> (i32, i32) {
    %c0_i32 = arith.constant 0 : i32
    %c0_i32_0 = arith.constant 0 : i32
    return %arg0, %c0_i32 : i32, i32
  }
  func.func @transform_2(%arg0: i32) -> (i32, i32) {
    %c0_i32 = arith.constant 0 : i32
    %c0_i32_0 = arith.constant 0 : i32
    return %arg0, %c0_i32 : i32, i32
  }
  func.func @transform_3(%arg0: i32) -> (i32, i32) {
    %c0_i32 = arith.constant 0 : i32
    %c0_i32_0 = arith.constant 0 : i32
    return %arg0, %c0_i32 : i32, i32
  }
  func.func @transform_4(%arg0: i32) -> (i32, i32) {
    %c0_i32 = arith.constant 0 : i32
    %c0_i32_0 = arith.constant 0 : i32
    %c0_i32_1 = arith.constant 0 : i32
    return %c0_i32, %c0_i32_0 : i32, i32
  }
  func.func @transform_5(%arg0: i32) -> (i32, i32, i32) {
    %c0_i32 = arith.constant 0 : i32
    %c0_i32_0 = arith.constant 0 : i32
    %c0_i32_1 = arith.constant 0 : i32
    return %arg0, %c0_i32, %c0_i32_0 : i32, i32, i32
  }
}

</mosaic_0001>

<bundles_post_ra>
// kernel: tpu_custom_call.1
= control target key start
LH: loop header
LB: loop body
LE: loop exit
PB: predicated region body
PF: predicated region fallthrough
CT: control target
= control target key end

     0   :  { %v203_v2 = vmov 0   ;;  %s268_s0 = inlined_call_operand.vmem [shape: f32[16,1], index: 0, kind: input, shape index: {}]   ;;  %s269_s1 = inlined_call_operand.vmem [shape: bf16[16,128], index: 1, kind: input, shape index: {}]   ;;  %s270_s2 = inlined_call_operand.vmem [shape: bf16[16,128], index: 2, kind: input, shape index: {}]   ;;  %s271_s3 = inlined_call_operand.vmem [shape: bf16[16,128], index: 3, kind: input, shape index: {}]   ;;  %s272_s4 = inlined_call_operand.vmem [shape: f32[2,128], index: 4, kind: input, shape index: {}]   ;;  %s273_s5 = inlined_call_operand.hbm [shape: f32[1,1,128], index: 5, kind: output, shape index: {}]  }
   0x1   :  { %v23_v0 = vld [vmem:[%s268_s0] sm:$0xff]  ;;  %v24_v1 = vld [vmem:[%s268_s0 + $0x8] sm:$0xff]  ;;  %169 = vset.pattern.permute.xlu0 %v203_v2  ;;  %170 = vset.pattern.permute.xlu1 %v203_v2 }
   0x2   :  { %v53_v3 = vand.u32 2147483647, %v23_v0  ;;  %v54_v4 = vand.u32 2147483647, %v24_v1  ;;  %93 = vperm.xlu0 %169, %v23_v0  }
   0x4   :  { %v55_v5 = vsub.f32 0.0, %v53_v3  ;;  %v56_v6 = vsub.f32 0.0, %v54_v4 }
   0x5   :  { %10 = vsyncpa [#allocation3], 0  ;;  %v85_v9 = vmul.f32 0.7, %v23_v0  ;;  %v51_v22 = vmax.f32 %v23_v0, 0.0  ;;  %v52_v25 = vmax.f32 %v24_v1, 0.0 }
   0x6   :  { %v57_v7 = vmul.f32 1.442695, %v55_v5  ;;  %v59_v8 = vmul.f32 1.442695, %v56_v6  ;;  %98 = vperm.xlu0 %169, %v24_v1   ;;  %v86_v33 = vmul.f32 0.7, %v24_v1 }
   0x7   :  { %v156_v37 = vld [vmem:[%s269_s1] sm:$0xff]  }
   0x8   :  { %171 = vpow2.f32 %v57_v7  ;;  %v160_v38 = vld [vmem:[%s270_s2] sm:$0xff]   ;;  %v157_v39 = vunpack.c.l.bf16 %v156_v37  ;;  %v158_v43 = vunpack.c.h.bf16 %v156_v37 }
   0x9   :  { %173 = vpow2.f32 %v59_v8  ;;  %v161_v41 = vunpack.c.l.bf16 %v160_v38  ;;  %v162_v45 = vunpack.c.h.bf16 %v160_v38  ;;  %v164_v47 = vld [vmem:[%s271_s3] sm:$0xff]   ;;  %s204_s3 = smov [#allocation2]  }
   0xa   :  { %117 = vperm.xlu0 %169, %v85_v9   ;;  %v47_v42 = vsub.f32 1.0, %v157_v39  ;;  %v48_v48 = vsub.f32 1.0, %v158_v43  ;;  %v153_v50 = vld [vmem:[%s272_s4 + $0x1] ss:$0 sm:$0xff]  ;;  %v165_v52 = vunpack.c.l.bf16 %v164_v47  ;;  %v154_v59 = vld [vmem:[%s272_s4] ss:$0 sm:$0xff]  ;;  %v166_v61 = vunpack.c.h.bf16 %v164_v47 }
   0xb   :  { %vm45_vm2 = vcmp.ne.f32.partialorder %v161_v41, 0.0  ;;  %vm46_vm3 = vcmp.ne.f32.partialorder %v162_v45, 0.0  ;;  %v37_v54 = vmul.f32 %v161_v41, %v153_v50  ;;  %v38_v57 = vmul.f32 %v162_v45, %v153_v50  ;;  %s145_s29 = sshll.u32 %s204_s3, 4  ;;  %s146_s29 = int_to_ptr.vmem [resolvable:$true] %s145_s29 }
   0xc   :  { %v49_v46 = vsel %vm45_vm2, %v47_v42, %v157_v39  ;;  %v50_v55 = vsel %vm46_vm3, %v48_v48, %v158_v43  ;;  %s179_s4 = scalar_lea.vmem %s146_s29, 16  ;;  %s183_s30 = scalar_lea.vmem %s146_s29, 32 }
   0xd   :  { %v43_v63 = vadd.f32 %v154_v59, %v37_v54  ;;  %v44_v3 = vadd.f32 %v154_v59, %v38_v57  ;;  %p180_p0 = scmp.ne.s32.totalorder %s146_s29, %s179_s4  ;;  %p184_p1 = scmp.lt.s32.totalorder %s146_s29, %s146_s29 }
   0xe   :  { %p185_p2 = scmp.lt.s32.totalorder %s183_s30, %s179_s4 }
  0x10   :  { %p186_p3 = por %p185_p2, %p184_p1 }
  0x12   :  { %v172_v10 = vpop.eup %171  ;;  %p187_p4 = pnand %p186_p3, %p180_p0 }
  0x13   :  { %v174_v11 = vpop.eup %173  ;;  %v61_v12 = vadd.f32 1.0, %v172_v10  ;;  %v64_v14 = vmul.f32 -0.5, %v172_v10  ;;  %v67_v17 = vand.u32 2147483647, %v172_v10 }
  0x14   :  { %v70_v13 = vadd.f32 1.0, %v174_v11  ;;  %v73_v15 = vmul.f32 -0.5, %v174_v11  ;;  %v76_v19 = vand.u32 2147483647, %v174_v11 }
  0x15   :  { %175 = vlog2.f32 %v61_v12  ;;  %v65_v16 = vadd.f32 1.0, %v64_v14  ;;  %vm68_vm0 = vcmp.lt.f32.partialorder %v67_v17, 0.0004427343 }
  0x16   :  { %177 = vlog2.f32 %v70_v13  ;;  %v74_v18 = vadd.f32 1.0, %v73_v15  ;;  %vm77_vm1 = vcmp.lt.f32.partialorder %v76_v19, 0.0004427343 }
  0x17   :  { %v66_v20 = vmul.f32 %v172_v10, %v65_v16 }
  0x18   :  { %v75_v23 = vmul.f32 %v174_v11, %v74_v18 }
  0x1f   :  { %v176_v21 = vpop.eup %175 }
  0x20   :  { %v178_v24 = vpop.eup %177  ;;  %v63_v26 = vmul.f32 0.6931472, %v176_v21 }
  0x21   :  { %v72_v27 = vmul.f32 0.6931472, %v178_v24 }
  0x22   :  { %v69_v28 = vsel %vm68_vm0, %v66_v20, %v63_v26 }
  0x23   :  { %v79_v29 = vadd.f32 %v69_v28, %v51_v22  ;;  %v78_v30 = vsel %vm77_vm1, %v75_v23, %v72_v27 }
  0x24   :  { %v80_v31 = vadd.f32 %v78_v30, %v52_v25 }
  0x25   :  { %v87_v32 = vmul.f32 1.7, %v79_v29 }
  0x26   :  { %v88_v34 = vmul.f32 1.7, %v80_v31 }
  0x27   :  { %v89_v35 = vsub.f32 %v87_v32, %v85_v9 }
  0x28   :  { %v90_v36 = vsub.f32 %v88_v34, %v86_v33 }
  0x29   :  { %105 = vperm.xlu1 %170, %v89_v35  }
  0x2d   :  { %110 = vperm.xlu1 %170, %v90_v36  }
  0x31   :  { %122 = vperm.xlu1 %170, %v86_v33  }
  0x81   :  { %v94_v40 = vpop.permute.xlu0 %93 }
  0x82   :  { %v101_v51 = vmul.f32 %v94_v40, %v49_v46 }
  0x85   :  { %v99_v44 = vpop.permute.xlu0 %98 }
  0x86   :  { %v102_v62 = vmul.f32 %v99_v44, %v50_v55 }
  0x89   :  { %v118_v53 = vpop.permute.xlu0 %117 }
  0x8a   :  { %v125_v58 = vmul.f32 %v165_v52, %v118_v53 }
  0xa8   :  { %v106_v49 = vpop.permute.xlu1 %105 }
  0xa9   :  { %v113_v60 = vsub.f32 %v106_v49, %v101_v51 }
  0xab   :  { %v127_v1 = vadd.f32 %v125_v58, %v113_v60 }
  0xac   :  { %v111_v56 = vpop.permute.xlu1 %110 }
  0xad   :  { %v114_v2 = vsub.f32 %v111_v56, %v102_v62  ;;  %v129_v6 = vmul.f32 %v127_v1, %v43_v63 }
  0xb0   :  { %v123_v0 = vpop.permute.xlu1 %122 }
  0xb1   :  { %v126_v4 = vmul.f32 %v166_v61, %v123_v0 }
  0xb3   :  { %v128_v5 = vadd.f32 %v126_v4, %v114_v2 }
  0xb5   :  { %v130_v7 = vmul.f32 %v128_v5, %v44_v3 }
  0xb7   :  { %v131_v8 = vadd.f32 %v130_v7, %v129_v6 }
  0xb9   :  { %v132_v9 = vrot.slane %v131_v8, 4 }
  0xbb   :  { %v133_v10 = vadd.f32 %v132_v9, %v131_v8 }
  0xbd   :  { %v134_v11 = vrot.slane %v133_v10, 2 }
  0xbf   :  { %v135_v12 = vadd.f32 %v134_v11, %v133_v10 }
  0xc1   :  { %v136_v13 = vrot.slane %v135_v12, 1 }
  0xc3   :  { %v137_v14 = vadd.f32 %v136_v13, %v135_v12 }
  0xc5   :  { %138 = vst [vmem:[#allocation2] sm:$0x1] %v137_v14 }
  0xc6   :  { %190 = shalt.err (!%p187_p4)
}
  0xc7   :  { %s191_s8 = scalar_lea.hbm %s273_s5, 16 }
  0xc8   :  { %p192_p5 = scmp.ne.s32.totalorder %s273_s5, %s191_s8  ;;  %p195_p6 = scmp.lt.u32.totalorder %s191_s8, %s273_s5 }
  0xca   :  { %p197_p7 = pnand %p195_p6, %p192_p5 }
  0xcc   :  { %200 = shalt.err (!%p197_p7)
}
  0xcd   :  { %148 = dma.vmem_to_hbm [thread:$0]  %s146_s29, 16, %s273_s5, [#allocation3]  }
  0xce   :  { %201 = dma.done.wait [#allocation3], 16  }
  0xcf   :  { %202 = vsyncadd [#allocation3], 4294967280 }
  0xd0   :  { %152 = vsyncpa [#allocation3], 1 }

</bundles_post_ra>
